<compile_context>
chip_gen: v5e
topology: v5e:2x2
jax: 0.10.0
libtpu: 0.0.40
codegen_flags: <defaults>
</compile_context>

<pallas_src>
import functools

import jax
import jax.numpy as jnp
from jax import lax
from jax.experimental import pallas as pl
from jax.experimental.pallas import tpu as pltpu  # noqa: F401  (TPU backend / future CompilerParams)

LANE = 128  # pad the output feature dim to a full 128-lane width


def linear_kernel(x_ref, w_ref, b_ref, o_ref):
    # x_ref: (B, K) f32, w_ref: (N_pad, K) f32 (torch layout, zero-padded),
    # b_ref: (1, N_pad) f32, o_ref: (B, N_pad) f32.
    # Contract x dim 1 with w dim 1 -> (B, N_pad).  MXU accumulates in f32;
    # no wrapper-side transpose of the weight is ever materialized.
    acc = lax.dot_general(
        x_ref[...], w_ref[...],
        dimension_numbers=(((1,), (1,)), ((), ())),
        preferred_element_type=jnp.float32,
    )
    o_ref[...] = acc + b_ref[...]


def prepare_params(weight, bias, n_pad=LANE):
    """One-time parameter prep (outside the per-call hot path).

    Zero-pads the torch-layout Linear(512, 10) weight (10, 512) -> (128, 512)
    and bias (10,) -> (1, 128) so the kernel output is lane-dense.
    """
    n_out, k = weight.shape
    w_pad = jnp.zeros((n_pad, k), jnp.float32).at[:n_out, :].set(
        weight.astype(jnp.float32))
    b_pad = jnp.zeros((1, n_pad), jnp.float32).at[0, :n_out].set(
        bias.astype(jnp.float32))
    return w_pad, b_pad, n_out


@functools.partial(jax.jit, static_argnames=("n_out",))
def vgg_d_forward(x_nchw, w_pad, b_pad, n_out=10):
    """x_nchw: (B, C, H, W) with C*H*W == K.  w_pad: (N_pad, K), b_pad: (1, N_pad).
    Returns (B, n_out) float32 logits."""
    B = x_nchw.shape[0]
    # Identity HookLayer is a no-op; flatten matches torch .view(B, -1)
    # (row-major) and is a free bitcast inside the jit.
    x_flat = x_nchw.reshape(B, -1)
    if x_flat.dtype != jnp.float32:
        x_flat = x_flat.astype(jnp.float32)

    n_pad, k = w_pad.shape
    assert x_flat.shape[1] == k

    out_pad = pl.pallas_call(
        linear_kernel,
        out_shape=jax.ShapeDtypeStruct((B, n_pad), jnp.float32),
        in_specs=[
            pl.BlockSpec(x_flat.shape, lambda: (0, 0)),
            pl.BlockSpec(w_pad.shape, lambda: (0, 0)),
            pl.BlockSpec(b_pad.shape, lambda: (0, 0)),
        ],
        out_specs=pl.BlockSpec((B, n_pad), lambda: (0, 0)),
    )(x_flat, w_pad, b_pad)

    # Padded columns are exact zeros (zero weight rows + zero bias); slicing
    # back to n_out is fused by XLA under this jit.
    return out_pad[:, :n_out]


if __name__ == "__main__":
    key = jax.random.PRNGKey(0)
    kx, kw, kb = jax.random.split(key, 3)

    # Input: NCHW with C*H*W = 2*16*16 = 512 features per sample.
    x = jax.random.normal(kx, (2, 2, 16, 16), dtype=jnp.float32)

    # Deterministic Linear(512, 10) params (uniform in +/- 1/sqrt(512),
    # matching nn.Linear's default init scale).
    in_features, out_features = 512, 10
    bound = 1.0 / (in_features ** 0.5)
    weight = jax.random.uniform(
        kw, (out_features, in_features), minval=-bound, maxval=bound,
        dtype=jnp.float32)
    bias = jax.random.uniform(
        kb, (out_features,), minval=-bound, maxval=bound, dtype=jnp.float32)

    # One-time parameter prep (lane-dense padding), kept out of the hot path.
    w_pad, b_pad, n_out = prepare_params(weight, bias)

    out = vgg_d_forward(x, w_pad, b_pad, n_out=n_out)
    jax.block_until_ready(out)

    # Reference check in plain JAX.
    ref = x.reshape(2, -1) @ weight.T + bias
    assert out.shape == (2, 10)
    assert jnp.allclose(out, ref, atol=1e-5, rtol=1e-5)

    print("KERNEL_OK")
</pallas_src>

<mosaic_0001>
module attributes {stable_mosaic.version = 11 : i64} {
  func.func @linear_kernel(%arg0: memref<2x512xf32, #tpu.memory_space<vmem>>, %arg1: memref<128x512xf32, #tpu.memory_space<vmem>>, %arg2: memref<1x128xf32, #tpu.memory_space<vmem>>, %arg3: memref<2x128xf32, #tpu.memory_space<vmem>>) attributes {dimension_semantics = [], scalar_prefetch = 0 : i64, scratch_operands = 0 : i64, tpu.core_type = #tpu.core_type<tc>} {
    %c0 = arith.constant 0 : index
    %c0_0 = arith.constant 0 : index
    %0 = vector.load %arg0[%c0, %c0_0] : memref<2x512xf32, #tpu.memory_space<vmem>>, vector<2x512xf32>
    %c0_1 = arith.constant 0 : index
    %c0_2 = arith.constant 0 : index
    %1 = vector.load %arg1[%c0_1, %c0_2] : memref<128x512xf32, #tpu.memory_space<vmem>>, vector<128x512xf32>
    %cst = arith.constant dense<0.000000e+00> : vector<2x128xf32>
    %2 = tpu.matmul %0, %1, %cst {dimension_numbers = #tpu.dot_dimension_numbers<[1], [1], [0], [0], [0, 0, 1, 0], [], []>} : vector<2x512xf32>, vector<128x512xf32>, vector<2x128xf32> -> vector<2x128xf32>
    %c0_3 = arith.constant 0 : index
    %c0_4 = arith.constant 0 : index
    %3 = vector.load %arg2[%c0_3, %c0_4] : memref<1x128xf32, #tpu.memory_space<vmem>>, vector<1x128xf32>
    %4 = vector.broadcast %3 : vector<1x128xf32> to vector<2x128xf32>
    %5 = arith.addf %2, %4 : vector<2x128xf32>
    %c0_5 = arith.constant 0 : index
    %c0_6 = arith.constant 0 : index
    %6 = vector.load %arg3[%c0_5, %c0_6] : memref<2x128xf32, #tpu.memory_space<vmem>>, vector<2x128xf32>
    tpu.vector_store %arg3[%c0_5, %c0_6], %5 {strides = array<i32>} : memref<2x128xf32, #tpu.memory_space<vmem>>, vector<2x128xf32>,
    return
  }
}

</mosaic_0001>

<bundles_post_ra>
// kernel: vgg_d_forward.1
= control target key start
LH: loop header
LB: loop body
LE: loop exit
PB: predicated region body
PF: predicated region fallthrough
CT: control target
= control target key end

     0   :  { %8 = vsyncpa [#allocation3], 0  ;;  %s301_s0 = inlined_call_operand.vmem [shape: f32[2,512], index: 0, kind: input, shape index: {}]   ;;  %s302_s1 = inlined_call_operand.hbm [shape: f32[128,512], index: 1, kind: input, shape index: {}]   ;;  %s303_s2 = inlined_call_operand.vmem [shape: f32[1,128], index: 2, kind: input, shape index: {}]   ;;  %s304_s3 = inlined_call_operand.hbm [shape: f32[2,128], index: 3, kind: output, shape index: {}]  }
   0x1   :  { %9 = vsyncpa [#allocation4], 0  ;;  %s16_s14 = sshll.u32 %s302_s1, 4  ;;  %s265_s15 = smov [#allocation2]   ;;  %s17_s14 = int_to_ptr.hbm [resolvable:$true] %s16_s14 }
   0x2   :  { %s18_s16 = sshll.u32 %s265_s15, 4  ;;  %s266_s17 = smov 512   ;;  %s19_s16 = int_to_ptr.vmem [resolvable:$true] %s18_s16 }
   0x3   :  { %s267_s18 = smov 32  }
   0x4   :  { %24 = dma.hbm_to_vmem [thread:$0]  %s17_s14, 8192, %s19_s16, [#allocation3], %s266_s17, %s266_s17, %s267_s18  }
   0x5   :  { %261 = dma.done.wait [#allocation3], 8192  }
   0x6   :  { %262 = vsyncadd [#allocation3], 4294959104  ;;  %v94_v0 = vld [vmem:[#allocation2 + $0x1f0] sm:$0xff]  ;;  %v92_v1 = vld [vmem:[#allocation2 + $0x1e0] sm:$0xff]  ;;  %s268_s21 = smov [#allocation5]   ;;  %s198_s25 = sshll.u32 %s304_s3, 4  ;;  %s199_s25 = int_to_ptr.hbm [resolvable:$true] %s198_s25 }
   0x7   :  { %v95_v2 = vld [vmem:[#allocation2 + $0x1f8] sm:$0xff]  ;;  %150 = vmatpush.xpose.msra.mxu2 %v94_v0  ;;  %110 = vmatpush.xpose.msra.mxu0 %v92_v1  ;;  %v93_v3 = vld [vmem:[#allocation2 + $0x1e8] sm:$0xff]  ;;  %v90_v4 = vld [vmem:[#allocation2 + $0x1d0] sm:$0xff]  ;;  %s196_s22 = sshll.u32 %s268_s21, 4  ;;  %s197_s22 = int_to_ptr.vmem [resolvable:$true] %s196_s22 }
   0x8   :  { %170 = vmatpush.xpose.msra.mxu3 %v95_v2  ;;  %130 = vmatpush.xpose.msra.mxu1 %v93_v3  ;;  %v88_v5 = vld [vmem:[#allocation2 + $0x1c0] sm:$0xff]  ;;  %v91_v6 = vld [vmem:[#allocation2 + $0x1d8] sm:$0xff]  ;;  %v89_v7 = vld [vmem:[#allocation2 + $0x1c8] sm:$0xff] }
   0x9   :  { %v86_v8 = vld [vmem:[#allocation2 + $0x1b0] sm:$0xff]  ;;  %v84_v9 = vld [vmem:[#allocation2 + $0x1a0] sm:$0xff]  ;;  %v87_v10 = vld [vmem:[#allocation2 + $0x1b8] sm:$0xff] }
   0xa   :  { %v85_v11 = vld [vmem:[#allocation2 + $0x1a8] sm:$0xff]  ;;  %v82_v12 = vld [vmem:[#allocation2 + $0x190] sm:$0xff]  ;;  %v80_v13 = vld [vmem:[#allocation2 + $0x180] sm:$0xff] }
   0xb   :  { %151 = vmatpush.xpose.msra.mxu2 %v90_v4  ;;  %111 = vmatpush.xpose.msra.mxu0 %v88_v5  ;;  %v83_v14 = vld [vmem:[#allocation2 + $0x198] sm:$0xff]  ;;  %v81_v15 = vld [vmem:[#allocation2 + $0x188] sm:$0xff]  ;;  %v78_v16 = vld [vmem:[#allocation2 + $0x170] sm:$0xff] }
   0xc   :  { %171 = vmatpush.xpose.msra.mxu3 %v91_v6  ;;  %131 = vmatpush.xpose.msra.mxu1 %v89_v7  ;;  %v76_v17 = vld [vmem:[#allocation2 + $0x160] sm:$0xff]  ;;  %v79_v18 = vld [vmem:[#allocation2 + $0x178] sm:$0xff]  ;;  %v77_v19 = vld [vmem:[#allocation2 + $0x168] sm:$0xff] }
   0xd   :  { %v74_v20 = vld [vmem:[#allocation2 + $0x150] sm:$0xff]  ;;  %v72_v21 = vld [vmem:[#allocation2 + $0x140] sm:$0xff]  ;;  %v75_v22 = vld [vmem:[#allocation2 + $0x158] sm:$0xff] }
   0xe   :  { %v73_v23 = vld [vmem:[#allocation2 + $0x148] sm:$0xff]  ;;  %v70_v24 = vld [vmem:[#allocation2 + $0x130] sm:$0xff]  ;;  %v68_v25 = vld [vmem:[#allocation2 + $0x120] sm:$0xff] }
   0xf   :  { %152 = vmatpush.xpose.msra.mxu2 %v86_v8  ;;  %112 = vmatpush.xpose.msra.mxu0 %v84_v9  ;;  %v71_v26 = vld [vmem:[#allocation2 + $0x138] sm:$0xff]  ;;  %v69_v27 = vld [vmem:[#allocation2 + $0x128] sm:$0xff]  ;;  %v66_v29 = vld [vmem:[#allocation2 + $0x110] sm:$0xff] }
  0x10   :  { %172 = vmatpush.xpose.msra.mxu3 %v87_v10  ;;  %132 = vmatpush.xpose.msra.mxu1 %v85_v11  ;;  %v31_v28 = vld [vmem:[%s301_s0] sm:$0xff]  ;;  %v64_v30 = vld [vmem:[#allocation2 + $0x100] sm:$0xff]  ;;  %v65_v32 = vld [vmem:[#allocation2 + $0x108] sm:$0xff] }
  0x11   :  { %101 = vst [vmem:[#allocation1] ss:$4 sm:$0xff] %v31_v28  ;;  %v67_v31 = vld [vmem:[#allocation2 + $0x118] sm:$0xff]  ;;  %v62_v33 = vld [vmem:[#allocation2 + $0xf0] sm:$0xff]  ;;  %v60_v34 = vld [vmem:[#allocation2 + $0xe0] sm:$0xff] }
  0x12   :  { %v63_v35 = vld [vmem:[#allocation2 + $0xf8] sm:$0xff]  ;;  %v61_v36 = vld [vmem:[#allocation2 + $0xe8] sm:$0xff]  ;;  %v58_v37 = vld [vmem:[#allocation2 + $0xd0] sm:$0xff] }
  0x13   :  { %153 = vmatpush.xpose.msra.mxu2 %v82_v12  ;;  %113 = vmatpush.xpose.msra.mxu0 %v80_v13  ;;  %v56_v38 = vld [vmem:[#allocation2 + $0xc0] sm:$0xff]  ;;  %v59_v39 = vld [vmem:[#allocation2 + $0xd8] sm:$0xff]  ;;  %v57_v40 = vld [vmem:[#allocation2 + $0xc8] sm:$0xff] }
  0x14   :  { %173 = vmatpush.xpose.msra.mxu3 %v83_v14  ;;  %133 = vmatpush.xpose.msra.mxu1 %v81_v15  ;;  %v54_v41 = vld [vmem:[#allocation2 + $0xb0] sm:$0xff]  ;;  %v52_v42 = vld [vmem:[#allocation2 + $0xa0] sm:$0xff]  ;;  %v55_v43 = vld [vmem:[#allocation2 + $0xb8] sm:$0xff] }
  0x15   :  { %v53_v44 = vld [vmem:[#allocation2 + $0xa8] sm:$0xff]  ;;  %v50_v45 = vld [vmem:[#allocation2 + $0x90] sm:$0xff]  ;;  %v48_v46 = vld [vmem:[#allocation2 + $0x80] sm:$0xff] }
  0x16   :  { %v51_v47 = vld [vmem:[#allocation2 + $0x98] sm:$0xff]  ;;  %v49_v48 = vld [vmem:[#allocation2 + $0x88] sm:$0xff]  ;;  %v46_v49 = vld [vmem:[#allocation2 + $0x70] sm:$0xff] }
  0x17   :  { %154 = vmatpush.xpose.msra.mxu2 %v78_v16  ;;  %114 = vmatpush.xpose.msra.mxu0 %v76_v17  ;;  %v44_v50 = vld [vmem:[#allocation2 + $0x60] sm:$0xff]  ;;  %v47_v51 = vld [vmem:[#allocation2 + $0x78] sm:$0xff]  ;;  %v45_v52 = vld [vmem:[#allocation2 + $0x68] sm:$0xff] }
  0x18   :  { %174 = vmatpush.xpose.msra.mxu3 %v79_v18  ;;  %134 = vmatpush.xpose.msra.mxu1 %v77_v19  ;;  %v42_v53 = vld [vmem:[#allocation2 + $0x50] sm:$0xff]  ;;  %v40_v54 = vld [vmem:[#allocation2 + $0x40] sm:$0xff]  ;;  %v43_v55 = vld [vmem:[#allocation2 + $0x58] sm:$0xff] }
  0x19   :  { %v41_v56 = vld [vmem:[#allocation2 + $0x48] sm:$0xff]  ;;  %v38_v57 = vld [vmem:[#allocation2 + $0x30] sm:$0xff]  ;;  %v36_v58 = vld [vmem:[#allocation2 + $0x20] sm:$0xff] }
  0x1a   :  { %v39_v59 = vld [vmem:[#allocation2 + $0x38] sm:$0xff]  ;;  %v37_v60 = vld [vmem:[#allocation2 + $0x28] sm:$0xff]  ;;  %v34_v61 = vld [vmem:[#allocation2 + $0x10] sm:$0xff] }
  0x1b   :  { %155 = vmatpush.xpose.msra.mxu2 %v74_v20  ;;  %115 = vmatpush.xpose.msra.mxu0 %v72_v21  ;;  %v32_v62 = vld [vmem:[#allocation2] sm:$0xff]  ;;  %v35_v63 = vld [vmem:[#allocation2 + $0x18] sm:$0xff]  ;;  %v33_v0 = vld [vmem:[#allocation2 + $0x8] sm:$0xff] }
  0x1c   :  { %175 = vmatpush.xpose.msra.mxu3 %v75_v22  ;;  %135 = vmatpush.xpose.msra.mxu1 %v73_v23  ;;  %v104_v1 = vld.sshfl [vmem:[#allocation1 + $0x10] sm:$0xff pattern:$0x73625140]  ;;  %v102_v2 = vld.sshfl [vmem:[#allocation1] sm:$0xff pattern:$0x73625140] }
  0x1d   :  { %v105_v3 = vld.sshfl [vmem:[#allocation1 + $0x18] sm:$0xff pattern:$0x73625140]  ;;  %v103_v4 = vld.sshfl [vmem:[#allocation1 + $0x8] sm:$0xff pattern:$0x73625140] }
  0x1e   :  { %v212_v5 = vld [vmem:[%s303_s2] ss:$0 sm:$0xff] }
  0x1f   :  { %156 = vmatpush.xpose.msra.mxu2 %v70_v24  ;;  %116 = vmatpush.xpose.msra.mxu0 %v68_v25 }
  0x20   :  { %176 = vmatpush.xpose.msra.mxu3 %v71_v26  ;;  %136 = vmatpush.xpose.msra.mxu1 %v69_v27 }
  0x23   :  { %157 = vmatpush.xpose.msra.mxu2 %v66_v29  ;;  %117 = vmatpush.xpose.msra.mxu0 %v64_v30 }
  0x24   :  { %177 = vmatpush.xpose.msra.mxu3 %v67_v31  ;;  %137 = vmatpush.xpose.msra.mxu1 %v65_v32 }
  0x27   :  { %158 = vmatpush.xpose.msra.mxu2 %v62_v33  ;;  %118 = vmatpush.xpose.msra.mxu0 %v60_v34 }
  0x28   :  { %178 = vmatpush.xpose.msra.mxu3 %v63_v35  ;;  %138 = vmatpush.xpose.msra.mxu1 %v61_v36 }
  0x2b   :  { %159 = vmatpush.xpose.msra.mxu2 %v58_v37  ;;  %119 = vmatpush.xpose.msra.mxu0 %v56_v38 }
  0x2c   :  { %179 = vmatpush.xpose.msra.mxu3 %v59_v39  ;;  %139 = vmatpush.xpose.msra.mxu1 %v57_v40 }
  0x2f   :  { %160 = vmatpush.xpose.msra.mxu2 %v54_v41  ;;  %120 = vmatpush.xpose.msra.mxu0 %v52_v42 }
  0x30   :  { %180 = vmatpush.xpose.msra.mxu3 %v55_v43  ;;  %140 = vmatpush.xpose.msra.mxu1 %v53_v44 }
  0x33   :  { %161 = vmatpush.xpose.msra.mxu2 %v50_v45  ;;  %121 = vmatpush.xpose.msra.mxu0 %v48_v46 }
  0x34   :  { %181 = vmatpush.xpose.msra.mxu3 %v51_v47  ;;  %141 = vmatpush.xpose.msra.mxu1 %v49_v48 }
  0x37   :  { %162 = vmatpush.xpose.msra.mxu2 %v46_v49  ;;  %122 = vmatpush.xpose.msra.mxu0 %v44_v50 }
  0x38   :  { %182 = vmatpush.xpose.msra.mxu3 %v47_v51  ;;  %142 = vmatpush.xpose.msra.mxu1 %v45_v52 }
  0x3b   :  { %163 = vmatpush.xpose.msra.mxu2 %v42_v53  ;;  %123 = vmatpush.xpose.msra.mxu0 %v40_v54 }
  0x3c   :  { %183 = vmatpush.xpose.msra.mxu3 %v43_v55  ;;  %143 = vmatpush.xpose.msra.mxu1 %v41_v56 }
  0x3f   :  { %164 = vmatpush.xpose.msra.mxu2 %v38_v57  ;;  %124 = vmatpush.xpose.msra.mxu0 %v36_v58 }
  0x40   :  { %184 = vmatpush.xpose.msra.mxu3 %v39_v59  ;;  %144 = vmatpush.xpose.msra.mxu1 %v37_v60 }
  0x43   :  { %165 = vmatpush.xpose.msra.mxu2 %v34_v61  ;;  %125 = vmatpush.xpose.msra.mxu0 %v32_v62 }
  0x44   :  { %185 = vmatpush.xpose.msra.mxu3 %v35_v63  ;;  %145 = vmatpush.xpose.msra.mxu1 %v33_v0 }
  0x46   :  { %166 = vmatmul.f32.vlgmr.msra.gmra.mxu2 %v104_v1  ;;  %126 = vmatmul.f32.vlgmr.msra.gmra.mxu0 %v102_v2 }
  0x47   :  { %186 = vmatmul.f32.vlgmr.msra.gmra.mxu3 %v105_v3  ;;  %146 = vmatmul.f32.vlgmr.msra.gmra.mxu1 %v103_v4 }
  0xc3   :  { %v127_v6 = vpop.f32.mrf.mxu0 }
  0xc4   :  { %v128_v7 = vadd.f32 %v212_v5, %v127_v6  ;;  %v147_v8 = vpop.f32.mrf.mxu1 }
  0xc6   :  { %v148_v9 = vadd.f32 %v147_v8, %v128_v7 }
  0xc9   :  { %v167_v10 = vpop.f32.mrf.mxu2 }
  0xca   :  { %v168_v11 = vadd.f32 %v167_v10, %v148_v9  ;;  %v187_v12 = vpop.f32.mrf.mxu3 }
  0xcc   :  { %v188_v13 = vadd.f32 %v187_v12, %v168_v11 }
  0xce   :  { %190 = vst [vmem:[#allocation5] sm:$0x3] %v188_v13 }
  0xcf   :  { %201 = dma.vmem_to_hbm [thread:$0]  %s197_s22, 32, %s199_s25, [#allocation4]  }
  0xd0   :  { %263 = dma.done.wait [#allocation4], 32  }
  0xd1   :  { %264 = vsyncadd [#allocation4], 4294967264 }
  0xd2   :  { %206 = vsyncpa [#allocation3], 1 }
  0xd3   :  { %207 = vsyncpa [#allocation4], 1 }

</bundles_post_ra>
